<compile_context>
chip_gen: v7x
topology: tpu7x:2x2x1
jax: 0.10.0
libtpu: 0.0.40
codegen_flags: <defaults>
</compile_context>

<pallas_src>
import jax
import jax.numpy as jnp
from jax.experimental import pallas as pl
from jax.experimental.pallas import tpu as pltpu

_LANE = 128
_BLOCK_BYTES = 8 * 1024 * 1024   # per-block budget (4-8 MiB sweet spot)
_VMEM_LIMIT = 40 * 1024 * 1024   # 4 double-buffered 8 MiB blocks + headroom;
                                 # safely under v7x's 64 MiB physical VMEM.


def _cdiv(a, b):
    return -(-a // b)


def _round_up(a, m):
    return ((a + m - 1) // m) * m


def _binarize_kernel(x_ref, o_ref):
    # Select in the input dtype: avoids widening bf16/fp8 tiles to f32 vregs.
    one = jnp.ones((), dtype=x_ref.dtype)
    o_ref[...] = jnp.where(x_ref[...] >= 0, one, -one)


def _lane_dense_view(shape, n):
    """Pick (rows, cols) for a row-major reshape with cols as lane-dense
    (multiple of 128) as possible, without any padding or data movement."""
    if len(shape) >= 2 and shape[-1] >= _LANE and shape[-1] % _LANE == 0:
        cols = shape[-1]
    else:
        cols = next((c for c in (8192, 4096, 2048, 1024, 512, 256, _LANE)
                     if n % c == 0), None)
        if cols is None:
            # No lane-aligned factorization exists: keep the original last dim.
            # A full-extent lane block is always legal (lanes padded internally).
            cols = shape[-1] if len(shape) >= 1 else 1
    return n // cols, cols


def binarized_forward(x):
    """Forward pass of BinarizedModule: where(x >= 0, +1, -1), same dtype."""
    orig_shape = x.shape
    n = x.size
    if n == 0:
        return x

    itemsize = jnp.dtype(x.dtype).itemsize
    sub = max(8, 32 // itemsize)          # sublane packing: 8 f32 / 16 bf16 / 32 int8

    rows, cols = _lane_dense_view(orig_shape, n)
    x2 = x.reshape(rows, cols)            # row-major reshape: free

    # --- lane (last-dim) blocking: only kicks in for very wide rows ----------
    col_bytes = cols * itemsize
    if sub * col_bytes <= _BLOCK_BYTES:
        block_cols = cols                 # full extent -> always legal
    else:
        block_cols = max(_LANE,
                         (_BLOCK_BYTES // (sub * itemsize)) // _LANE * _LANE)
    n_col_blocks = _cdiv(cols, block_cols)

    # --- sublane (row) blocking ----------------------------------------------
    block_col_bytes = block_cols * itemsize
    rows_fit = max(sub, (_BLOCK_BYTES // block_col_bytes) // sub * sub)
    if rows <= rows_fit:
        block_rows = rows                 # full extent -> always legal
    else:
        block_rows = rows_fit             # multiple of `sub` -> legal; tail masked
    n_row_blocks = _cdiv(rows, block_rows)

    # --- v7x: 2 TensorCores share the parallel grid axes; prefer an even step
    #     count once the tensor is large enough that per-step overhead vanishes.
    total_bytes = n * itemsize
    if ((n_row_blocks * n_col_blocks) % 2 == 1
            and total_bytes >= (4 << 20) and rows >= 2 * sub):
        cand = _round_up(_cdiv(rows, n_row_blocks + 1), sub)
        if _cdiv(rows, cand) % 2 == 0:
            block_rows = cand
            n_row_blocks = _cdiv(rows, cand)

    out = pl.pallas_call(
        _binarize_kernel,
        out_shape=jax.ShapeDtypeStruct((rows, cols), x.dtype),
        grid=(n_row_blocks, n_col_blocks),
        in_specs=[pl.BlockSpec((block_rows, block_cols), lambda i, j: (i, j))],
        out_specs=pl.BlockSpec((block_rows, block_cols), lambda i, j: (i, j)),
        compiler_params=pltpu.CompilerParams(
            dimension_semantics=("parallel", "parallel"),
            vmem_limit_bytes=_VMEM_LIMIT,
        ),
        cost_estimate=pl.CostEstimate(
            flops=2 * n,
            transcendentals=0,
            bytes_accessed=2 * n * itemsize,
        ),
    )(x2)
    return out.reshape(orig_shape)


if __name__ == "__main__":
    key = jax.random.PRNGKey(0)
    # Small shape consistent with the module's (4, 480, 640) example input.
    x = jax.random.normal(key, (4, 64, 128), dtype=jnp.float32)

    out = binarized_forward(x)
    out = jax.block_until_ready(out)

    # Reference check (pure JAX), mirroring torch.where(input >= 0, 1, -1).
    ref = jnp.where(x >= 0, jnp.ones_like(x), -jnp.ones_like(x))
    assert out.shape == x.shape
    assert out.dtype == x.dtype
    assert bool(jnp.all(out == ref))

    print("KERNEL_OK")
</pallas_src>

<mosaic_0001>
module attributes {stable_mosaic.version = 11 : i64} {
  func.func @_binarize_kernel(%arg0: i32, %arg1: i32, %arg2: memref<256x128xf32, #tpu.memory_space<vmem>>, %arg3: memref<256x128xf32, #tpu.memory_space<vmem>>) attributes {dimension_semantics = [#tpu.dimension_semantics<parallel>, #tpu.dimension_semantics<parallel>], iteration_bounds = array<i64: 1, 1>, scalar_prefetch = 0 : i64, scratch_operands = 0 : i64, tpu.core_type = #tpu.core_type<tc>, window_params = [{transform_indices = @transform_0, window_bounds = array<i64: 256, 128>}, {transform_indices = @transform_1, window_bounds = array<i64: 256, 128>}]} {
    %c0 = arith.constant 0 : index
    %c0_0 = arith.constant 0 : index
    %0 = vector.load %arg2[%c0, %c0_0] : memref<256x128xf32, #tpu.memory_space<vmem>>, vector<256x128xf32>
    %cst = arith.constant 0.000000e+00 : f32
    %1 = vector.broadcast %cst : f32 to vector<256x128xf32>
    %2 = arith.cmpf oge, %0, %1 : vector<256x128xf32>
    %cst_1 = arith.constant 0.000000e+00 : f32
    %cst_2 = arith.constant 1.000000e+00 : f32
    %3 = arith.subf %cst_1, %cst_2 : f32
    %cst_3 = arith.constant 1.000000e+00 : f32
    %4 = vector.broadcast %cst_3 : f32 to vector<256x128xf32>
    %5 = vector.broadcast %3 : f32 to vector<256x128xf32>
    %6 = arith.select %2, %4, %5 : vector<256x128xi1>, vector<256x128xf32>
    %c0_4 = arith.constant 0 : index
    %c0_5 = arith.constant 0 : index
    %7 = vector.load %arg3[%c0_4, %c0_5] : memref<256x128xf32, #tpu.memory_space<vmem>>, vector<256x128xf32>
    tpu.vector_store %arg3[%c0_4, %c0_5], %6 {strides = array<i32>} : memref<256x128xf32, #tpu.memory_space<vmem>>, vector<256x128xf32>,
    return
  }
  func.func @transform_0(%arg0: i32, %arg1: i32) -> (i32, i32) {
    %c0_i32 = arith.constant 0 : i32
    return %arg0, %arg1 : i32, i32
  }
  func.func @transform_1(%arg0: i32, %arg1: i32) -> (i32, i32) {
    %c0_i32 = arith.constant 0 : i32
    return %arg0, %arg1 : i32, i32
  }
}

</mosaic_0001>

<bundles_post_ra>
// kernel: tpu_custom_call.1
= control target key start
LH: loop header
LB: loop body
LE: loop exit
PB: predicated region body
PF: predicated region fallthrough
CT: control target
= control target key end

     0   :  { %6 = vsyncpa [#allocation3], 0  ;;  %s301_s0 = inlined_call_operand.hbm [shape: f32[256,128], index: 0, kind: input, shape index: {}]   ;;  %s302_s1 = inlined_call_operand.hbm [shape: f32[256,128], index: 1, kind: output, shape index: {}]  }
   0x1   :  { %7 = vsyncpa [#allocation4], 0  ;;  %s221_s6 = smov [#allocation2]   ;;  %s173_s10 = scalar_lea.hbm %s301_s0, 4096 }
   0x2   :  { %s13_s7 = sshll.u32 %s221_s6, 4  ;;  %p174_p0 = scmp.ne.s32.totalorder %s301_s0, %s173_s10  ;;  %s14_s7 = int_to_ptr.vmem [resolvable:$true] %s13_s7 }
   0x3   :  { %p177_p1 = scmp.lt.u32.totalorder %s173_s10, %s301_s0 }
   0x5   :  { %p179_p2 = pnand %p177_p1, %p174_p0 }
   0x7   :  { %182 = shalt.err (!%p179_p2)
}
   0x8   :  { %s183_s15 = scalar_lea.vmem %s14_s7, 4096  ;;  %p188_p4 = scmp.lt.s32.totalorder %s14_s7, %s14_s7 }
   0x9   :  { %p184_p3 = scmp.ne.s32.totalorder %s14_s7, %s183_s15  ;;  %p189_p5 = scmp.lt.s32.totalorder %s183_s15, %s183_s15 }
   0xb   :  { %p190_p6 = por %p189_p5, %p188_p4 }
   0xd   :  { %p191_p7 = pnand %p190_p6, %p184_p3 }
   0xf   :  { %194 = shalt.err (!%p191_p7)
}
  0x10   :  { %s222_s16 = smov 128   ;;  %s223_s17 = smov 8  }
  0x11   :  { %19 = dma.hbm_to_vmem [thread:$0]  %s301_s0, 4096, %s14_s7, [#allocation3], %s222_s16, %s222_s16, %s223_s17  }
  0x12   :  { %217 = dma.done.wait [#allocation3], 4096  }
  0x13   :  { %218 = vsyncadd [#allocation3], 4294963200  ;;  %v23_v0 = vld [vmem:[#allocation2] sm:$0xff]  ;;  %v24_v1 = vld [vmem:[#allocation2 + $0x8] sm:$0xff]  ;;  %s224_s20 = smov [#allocation5]   ;;  %v225_v6 = vmov -1.0  }
  0x14   :  { %v25_v2 = vld [vmem:[#allocation2 + $0x10] sm:$0xff]  ;;  %s251_s21 = sshll.u32 %s224_s20, 4  ;;  %vm55_vm0 = vcmp.ge.f32.partialorder %v23_v0, 0.0  ;;  %vm56_vm1 = vcmp.ge.f32.partialorder %v24_v1, 0.0  ;;  %v26_v3 = vld [vmem:[#allocation2 + $0x18] sm:$0xff]  ;;  %v27_v4 = vld [vmem:[#allocation2 + $0x20] sm:$0xff]  ;;  %s157_s21 = int_to_ptr.vmem [resolvable:$true] %s251_s21 }
  0x15   :  { %vm57_vm2 = vcmp.ge.f32.partialorder %v25_v2, 0.0  ;;  %v28_v5 = vld [vmem:[#allocation2 + $0x28] sm:$0xff]  ;;  %v87_v7 = vsel %vm55_vm0, 1.0, %v225_v6  ;;  %v88_v8 = vsel %vm56_vm1, 1.0, %v225_v6  ;;  %vm58_vm3 = vcmp.ge.f32.partialorder %v26_v3, 0.0  ;;  %v29_v10 = vld [vmem:[#allocation2 + $0x30] sm:$0xff]  ;;  %p200_p9 = scmp.lt.s32.totalorder %s157_s21, %s157_s21 }
  0x16   :  { %v89_v9 = vsel %vm57_vm2, 1.0, %v225_v6  ;;  %v30_v11 = vld [vmem:[#allocation2 + $0x38] sm:$0xff]  ;;  %119 = vst [vmem:[#allocation5] sm:$0xff] %v87_v7  ;;  %120 = vst [vmem:[#allocation5 + $0x8] sm:$0xff] %v88_v8  ;;  %v90_v12 = vsel %vm58_vm3, 1.0, %v225_v6  ;;  %vm59_vm4 = vcmp.ge.f32.partialorder %v27_v4, 0.0 }
  0x17   :  { %121 = vst [vmem:[#allocation5 + $0x10] sm:$0xff] %v89_v9  ;;  %vm60_vm5 = vcmp.ge.f32.partialorder %v28_v5, 0.0  ;;  %vm61_vm6 = vcmp.ge.f32.partialorder %v29_v10, 0.0  ;;  %v31_v13 = vld [vmem:[#allocation2 + $0x40] sm:$0xff]  ;;  %v32_v14 = vld [vmem:[#allocation2 + $0x48] sm:$0xff]  ;;  %122 = vst [vmem:[#allocation5 + $0x18] sm:$0xff] %v90_v12 }
  0x18   :  { %v91_v15 = vsel %vm59_vm4, 1.0, %v225_v6  ;;  %v92_v16 = vsel %vm60_vm5, 1.0, %v225_v6  ;;  %v93_v17 = vsel %vm61_vm6, 1.0, %v225_v6  ;;  %vm62_vm7 = vcmp.ge.f32.partialorder %v30_v11, 0.0  ;;  %v33_v18 = vld [vmem:[#allocation2 + $0x50] sm:$0xff]  ;;  %v34_v19 = vld [vmem:[#allocation2 + $0x58] sm:$0xff] }
  0x19   :  { %123 = vst [vmem:[#allocation5 + $0x20] sm:$0xff] %v91_v15  ;;  %124 = vst [vmem:[#allocation5 + $0x28] sm:$0xff] %v92_v16  ;;  %v94_v20 = vsel %vm62_vm7, 1.0, %v225_v6  ;;  %vm63_vm8 = vcmp.ge.f32.partialorder %v31_v13, 0.0  ;;  %vm64_vm9 = vcmp.ge.f32.partialorder %v32_v14, 0.0  ;;  %vm65_vm10 = vcmp.ge.f32.partialorder %v33_v18, 0.0 }
  0x1a   :  { %125 = vst [vmem:[#allocation5 + $0x30] sm:$0xff] %v93_v17  ;;  %v35_v21 = vld [vmem:[#allocation2 + $0x60] sm:$0xff]  ;;  %v36_v22 = vld [vmem:[#allocation2 + $0x68] sm:$0xff]  ;;  %126 = vst [vmem:[#allocation5 + $0x38] sm:$0xff] %v94_v20  ;;  %v95_v23 = vsel %vm63_vm8, 1.0, %v225_v6  ;;  %v96_v24 = vsel %vm64_vm9, 1.0, %v225_v6 }
  0x1b   :  { %v97_v25 = vsel %vm65_vm10, 1.0, %v225_v6  ;;  %vm66_vm11 = vcmp.ge.f32.partialorder %v34_v19, 0.0  ;;  %v37_v26 = vld [vmem:[#allocation2 + $0x70] sm:$0xff]  ;;  %v38_v27 = vld [vmem:[#allocation2 + $0x78] sm:$0xff]  ;;  %127 = vst [vmem:[#allocation5 + $0x40] sm:$0xff] %v95_v23  ;;  %128 = vst [vmem:[#allocation5 + $0x48] sm:$0xff] %v96_v24 }
  0x1c   :  { %129 = vst [vmem:[#allocation5 + $0x50] sm:$0xff] %v97_v25  ;;  %v98_v28 = vsel %vm66_vm11, 1.0, %v225_v6  ;;  %vm67_vm12 = vcmp.ge.f32.partialorder %v35_v21, 0.0  ;;  %vm68_vm13 = vcmp.ge.f32.partialorder %v36_v22, 0.0  ;;  %vm69_vm14 = vcmp.ge.f32.partialorder %v37_v26, 0.0  ;;  %v39_v29 = vld [vmem:[#allocation2 + $0x80] sm:$0xff] }
  0x1d   :  { %v40_v30 = vld [vmem:[#allocation2 + $0x88] sm:$0xff]  ;;  %130 = vst [vmem:[#allocation5 + $0x58] sm:$0xff] %v98_v28  ;;  %v99_v31 = vsel %vm67_vm12, 1.0, %v225_v6  ;;  %v100_v32 = vsel %vm68_vm13, 1.0, %v225_v6  ;;  %v101_v33 = vsel %vm69_vm14, 1.0, %v225_v6  ;;  %vm70_vm15 = vcmp.ge.f32.partialorder %v38_v27, 0.0 }
  0x1e   :  { %v41_v34 = vld [vmem:[#allocation2 + $0x90] sm:$0xff]  ;;  %v42_v35 = vld [vmem:[#allocation2 + $0x98] sm:$0xff]  ;;  %131 = vst [vmem:[#allocation5 + $0x60] sm:$0xff] %v99_v31  ;;  %132 = vst [vmem:[#allocation5 + $0x68] sm:$0xff] %v100_v32  ;;  %v102_v36 = vsel %vm70_vm15, 1.0, %v225_v6  ;;  %vm71_vm0 = vcmp.ge.f32.partialorder %v39_v29, 0.0 }
  0x1f   :  { %133 = vst [vmem:[#allocation5 + $0x70] sm:$0xff] %v101_v33  ;;  %vm72_vm1 = vcmp.ge.f32.partialorder %v40_v30, 0.0  ;;  %vm73_vm2 = vcmp.ge.f32.partialorder %v41_v34, 0.0  ;;  %v43_v37 = vld [vmem:[#allocation2 + $0xa0] sm:$0xff]  ;;  %v44_v38 = vld [vmem:[#allocation2 + $0xa8] sm:$0xff]  ;;  %134 = vst [vmem:[#allocation5 + $0x78] sm:$0xff] %v102_v36 }
  0x20   :  { %v103_v39 = vsel %vm71_vm0, 1.0, %v225_v6  ;;  %v104_v40 = vsel %vm72_vm1, 1.0, %v225_v6  ;;  %v105_v41 = vsel %vm73_vm2, 1.0, %v225_v6  ;;  %vm74_vm3 = vcmp.ge.f32.partialorder %v42_v35, 0.0  ;;  %v45_v42 = vld [vmem:[#allocation2 + $0xb0] sm:$0xff]  ;;  %v46_v43 = vld [vmem:[#allocation2 + $0xb8] sm:$0xff] }
  0x21   :  { %135 = vst [vmem:[#allocation5 + $0x80] sm:$0xff] %v103_v39  ;;  %136 = vst [vmem:[#allocation5 + $0x88] sm:$0xff] %v104_v40  ;;  %v106_v44 = vsel %vm74_vm3, 1.0, %v225_v6  ;;  %vm75_vm4 = vcmp.ge.f32.partialorder %v43_v37, 0.0  ;;  %vm76_vm5 = vcmp.ge.f32.partialorder %v44_v38, 0.0  ;;  %vm77_vm6 = vcmp.ge.f32.partialorder %v45_v42, 0.0 }
  0x22   :  { %137 = vst [vmem:[#allocation5 + $0x90] sm:$0xff] %v105_v41  ;;  %v47_v45 = vld [vmem:[#allocation2 + $0xc0] sm:$0xff]  ;;  %v48_v46 = vld [vmem:[#allocation2 + $0xc8] sm:$0xff]  ;;  %138 = vst [vmem:[#allocation5 + $0x98] sm:$0xff] %v106_v44  ;;  %v107_v47 = vsel %vm75_vm4, 1.0, %v225_v6  ;;  %v108_v48 = vsel %vm76_vm5, 1.0, %v225_v6 }
  0x23   :  { %v109_v49 = vsel %vm77_vm6, 1.0, %v225_v6  ;;  %vm78_vm7 = vcmp.ge.f32.partialorder %v46_v43, 0.0  ;;  %v49_v50 = vld [vmem:[#allocation2 + $0xd0] sm:$0xff]  ;;  %v50_v51 = vld [vmem:[#allocation2 + $0xd8] sm:$0xff]  ;;  %139 = vst [vmem:[#allocation5 + $0xa0] sm:$0xff] %v107_v47  ;;  %140 = vst [vmem:[#allocation5 + $0xa8] sm:$0xff] %v108_v48 }
  0x24   :  { %141 = vst [vmem:[#allocation5 + $0xb0] sm:$0xff] %v109_v49  ;;  %v110_v52 = vsel %vm78_vm7, 1.0, %v225_v6  ;;  %vm79_vm8 = vcmp.ge.f32.partialorder %v47_v45, 0.0  ;;  %vm80_vm9 = vcmp.ge.f32.partialorder %v48_v46, 0.0  ;;  %vm81_vm10 = vcmp.ge.f32.partialorder %v49_v50, 0.0  ;;  %v51_v53 = vld [vmem:[#allocation2 + $0xe0] sm:$0xff] }
  0x25   :  { %v52_v54 = vld [vmem:[#allocation2 + $0xe8] sm:$0xff]  ;;  %142 = vst [vmem:[#allocation5 + $0xb8] sm:$0xff] %v110_v52  ;;  %v111_v55 = vsel %vm79_vm8, 1.0, %v225_v6  ;;  %v112_v56 = vsel %vm80_vm9, 1.0, %v225_v6  ;;  %v113_v57 = vsel %vm81_vm10, 1.0, %v225_v6  ;;  %vm82_vm11 = vcmp.ge.f32.partialorder %v50_v51, 0.0 }
  0x26   :  { %v53_v58 = vld [vmem:[#allocation2 + $0xf0] sm:$0xff]  ;;  %v54_v59 = vld [vmem:[#allocation2 + $0xf8] sm:$0xff]  ;;  %143 = vst [vmem:[#allocation5 + $0xc0] sm:$0xff] %v111_v55  ;;  %144 = vst [vmem:[#allocation5 + $0xc8] sm:$0xff] %v112_v56  ;;  %v114_v60 = vsel %vm82_vm11, 1.0, %v225_v6  ;;  %vm83_vm12 = vcmp.ge.f32.partialorder %v51_v53, 0.0 }
  0x27   :  { %145 = vst [vmem:[#allocation5 + $0xd0] sm:$0xff] %v113_v57  ;;  %vm84_vm13 = vcmp.ge.f32.partialorder %v52_v54, 0.0  ;;  %vm85_vm14 = vcmp.ge.f32.partialorder %v53_v58, 0.0  ;;  %146 = vst [vmem:[#allocation5 + $0xd8] sm:$0xff] %v114_v60  ;;  %v115_v61 = vsel %vm83_vm12, 1.0, %v225_v6  ;;  %vm86_vm15 = vcmp.ge.f32.partialorder %v54_v59, 0.0 }
  0x28   :  { %v116_v62 = vsel %vm84_vm13, 1.0, %v225_v6  ;;  %v117_v63 = vsel %vm85_vm14, 1.0, %v225_v6  ;;  %147 = vst [vmem:[#allocation5 + $0xe0] sm:$0xff] %v115_v61  ;;  %v118_v0 = vsel %vm86_vm15, 1.0, %v225_v6  ;;  %s195_s0 = scalar_lea.vmem %s157_s21, 4096 }
  0x29   :  { %148 = vst [vmem:[#allocation5 + $0xe8] sm:$0xff] %v116_v62  ;;  %149 = vst [vmem:[#allocation5 + $0xf0] sm:$0xff] %v117_v63  ;;  %p196_p8 = scmp.ne.s32.totalorder %s157_s21, %s195_s0  ;;  %p201_p10 = scmp.lt.s32.totalorder %s195_s0, %s195_s0 }
  0x2a   :  { %150 = vst [vmem:[#allocation5 + $0xf8] sm:$0xff] %v118_v0 }
  0x2b   :  { %p202_p11 = por %p201_p10, %p200_p9 }
  0x2d   :  { %p203_p12 = pnand %p202_p11, %p196_p8 }
  0x2f   :  { %206 = shalt.err (!%p203_p12)
}
  0x30   :  { %s207_s24 = scalar_lea.hbm %s302_s1, 4096 }
  0x31   :  { %p208_p13 = scmp.ne.s32.totalorder %s302_s1, %s207_s24  ;;  %p211_p0 = scmp.lt.u32.totalorder %s207_s24, %s302_s1 }
  0x33   :  { %p213_p1 = pnand %p211_p0, %p208_p13 }
  0x35   :  { %216 = shalt.err (!%p213_p1)
}
  0x36   :  { %162 = dma.vmem_to_hbm [thread:$0]  %s157_s21, 4096, %s302_s1, [#allocation4], %s222_s16, %s222_s16, %s223_s17  }
  0x37   :  { %219 = dma.done.wait [#allocation4], 4096  }
  0x38   :  { %220 = vsyncadd [#allocation4], 4294963200 }
  0x39   :  { %166 = vsyncpa [#allocation3], 1 }
  0x3a   :  { %167 = vsyncpa [#allocation4], 1 }

</bundles_post_ra>
